<compile_context>
chip_gen: v7x
topology: tpu7x:2x2x1
jax: 0.10.0
libtpu: 0.0.40
codegen_flags: <defaults>
</compile_context>

<pallas_src>
import jax
import jax.numpy as jnp
from jax.experimental import pallas as pl
from jax.experimental.pallas import tpu as pltpu


def _round_up(x, m):
    return (x + m - 1) // m * m


# ------------------------------- kernel ---------------------------------------
def flatten_head_kernel(x_ref, wt_ref, b_ref, o_ref, acc_ref):
    # x_ref:   (TR, TK)    TR flattened (batch * n_vars) rows, lanes = nf chunk
    # wt_ref:  (TK, TWp)   Linear weight chunk, pre-transposed + zero-padded
    # b_ref:   (1, TWp)    Linear bias, zero-padded
    # o_ref:   (TR, TWp)   lane-dense output tile
    # acc_ref: (TR, TWp)   float32 VMEM accumulator across the nf (k) grid axis
    k = pl.program_id(1)

    @pl.when(k == 0)
    def _():
        acc_ref[...] = jnp.zeros_like(acc_ref)

    acc_ref[...] += jnp.dot(
        x_ref[...], wt_ref[...], preferred_element_type=jnp.float32
    )

    @pl.when(k == pl.num_programs(1) - 1)
    def _():
        o_ref[...] = (acc_ref[...] + b_ref[...]).astype(o_ref.dtype)


# ------------------------------- wrapper ---------------------------------------
@jax.jit
def flatten_head_forward(x, weight, bias):
    # x:      [B, n_vars, d_model, patch_num]  float32
    # weight: [target_window, nf]  with nf = d_model * patch_num  (nn.Linear weight)
    # bias:   [target_window]
    B, V, D, P = x.shape
    nf = D * P
    tw = weight.shape[0]
    R = B * V

    # Pad contraction / output dims to lane width, rows to a multiple of the row tile.
    NFp = _round_up(nf, 128)
    TWp = _round_up(tw, 128)

    if R >= 256:
        TR = 256
    elif R >= 128:
        TR = 128
    else:
        TR = _round_up(R, 8)
    Rp = _round_up(R, TR)

    # K (nf) tile: single step for typical FlattenHead sizes, chunked for huge nf so
    # the (TK, TWp) weight tile + double-buffering stays well inside scoped VMEM.
    TK = NFp if NFp <= 2048 else 1024
    n_k = NFp // TK

    # Flatten(start_dim=-2): row-major reshape [B,V,D,P] -> [B*V, D*P] (matches torch).
    xf = x.reshape(R, nf).astype(jnp.float32)
    xf = jnp.pad(xf, ((0, Rp - R), (0, NFp - nf)))
    wt = jnp.pad(jnp.transpose(weight).astype(jnp.float32),
                 ((0, NFp - nf), (0, TWp - tw)))
    bp = jnp.pad(bias.astype(jnp.float32), (0, TWp - tw)).reshape(1, TWp)

    out = pl.pallas_call(
        flatten_head_kernel,
        out_shape=jax.ShapeDtypeStruct((Rp, TWp), jnp.float32),
        grid=(Rp // TR, n_k),
        in_specs=[
            pl.BlockSpec((TR, TK), lambda i, k: (i, k)),
            pl.BlockSpec((TK, TWp), lambda i, k: (k, 0)),
            pl.BlockSpec((1, TWp), lambda i, k: (0, 0)),
        ],
        out_specs=pl.BlockSpec((TR, TWp), lambda i, k: (i, 0)),
        scratch_shapes=[pltpu.VMEM((TR, TWp), jnp.float32)],
        compiler_params=pltpu.CompilerParams(
            dimension_semantics=("parallel", "arbitrary"),
            vmem_limit_bytes=64 << 20,
        ),
    )(xf, wt, bp)

    # Drop padding, restore [B, n_vars, target_window].  Dropout(p=0) == identity.
    return out[:R, :tw].reshape(B, V, tw)


# --------------------------------- main -----------------------------------------
if __name__ == "__main__":
    # Small config consistent with the module:
    #   batch=2, n_vars=4, d_model=32, patch_num=8  ->  nf = 256, target_window=24
    B, V, D, P = 2, 4, 32, 8
    nf = D * P
    target_window = 24

    key = jax.random.PRNGKey(0)
    kx, kw, kb = jax.random.split(key, 3)
    x = jax.random.normal(kx, (B, V, D, P), jnp.float32)
    weight = jax.random.normal(kw, (target_window, nf), jnp.float32) / jnp.sqrt(
        jnp.float32(nf))
    bias = 0.01 * jax.random.normal(kb, (target_window,), jnp.float32)

    out = flatten_head_forward(x, weight, bias)
    out = jax.block_until_ready(out)
    assert out.shape == (B, V, target_window), out.shape

    # Pure-JAX reference: Flatten(start_dim=-2) + Linear (dropout is identity).
    ref = x.reshape(B, V, nf) @ weight.T + bias
    assert jnp.allclose(out, ref, rtol=1e-4, atol=1e-4), "mismatch vs reference"

    print("KERNEL_OK")
</pallas_src>

<mosaic_0001>
module attributes {stable_mosaic.version = 11 : i64} {
  func.func @flatten_head_kernel(%arg0: i32, %arg1: i32, %arg2: memref<8x256xf32, #tpu.memory_space<vmem>>, %arg3: memref<256x128xf32, #tpu.memory_space<vmem>>, %arg4: memref<1x128xf32, #tpu.memory_space<vmem>>, %arg5: memref<8x128xf32, #tpu.memory_space<vmem>>, %arg6: memref<8x128xf32, #tpu.memory_space<vmem>>) attributes {dimension_semantics = [#tpu.dimension_semantics<parallel>, #tpu.dimension_semantics<arbitrary>], iteration_bounds = array<i64: 1, 1>, scalar_prefetch = 0 : i64, scratch_operands = 1 : i64, tpu.core_type = #tpu.core_type<tc>, window_params = [{transform_indices = @transform_0, window_bounds = array<i64: 8, 256>}, {transform_indices = @transform_1, window_bounds = array<i64: 256, 128>}, {pipeline_mode = #tpu.pipeline_mode<synchronous>, transform_indices = @transform_2, window_bounds = array<i64: 1, 128>}, {transform_indices = @transform_3, window_bounds = array<i64: 8, 128>}]} {
    %c0_i32 = arith.constant 0 : i32
    %0 = arith.cmpi eq, %arg1, %c0_i32 : i32
    %1 = arith.extui %0 : i1 to i32
    %c0_i32_0 = arith.constant 0 : i32
    %2 = arith.cmpi ne, %1, %c0_i32_0 : i32
    scf.if %2 {
      %cst_10 = arith.constant 0.000000e+00 : f32
      %12 = vector.broadcast %cst_10 : f32 to vector<8x128xf32>
      %c0_11 = arith.constant 0 : index
      %c0_12 = arith.constant 0 : index
      %13 = vector.load %arg6[%c0_11, %c0_12] : memref<8x128xf32, #tpu.memory_space<vmem>>, vector<8x128xf32>
      tpu.vector_store %arg6[%c0_11, %c0_12], %12 {strides = array<i32>} : memref<8x128xf32, #tpu.memory_space<vmem>>, vector<8x128xf32>,
    } else {
    }
    %c0 = arith.constant 0 : index
    %c0_1 = arith.constant 0 : index
    %3 = vector.load %arg6[%c0, %c0_1] : memref<8x128xf32, #tpu.memory_space<vmem>>, vector<8x128xf32>
    %c0_2 = arith.constant 0 : index
    %c0_3 = arith.constant 0 : index
    %4 = vector.load %arg2[%c0_2, %c0_3] : memref<8x256xf32, #tpu.memory_space<vmem>>, vector<8x256xf32>
    %c0_4 = arith.constant 0 : index
    %c0_5 = arith.constant 0 : index
    %5 = vector.load %arg3[%c0_4, %c0_5] : memref<256x128xf32, #tpu.memory_space<vmem>>, vector<256x128xf32>
    %cst = arith.constant dense<0.000000e+00> : vector<8x128xf32>
    %6 = tpu.matmul %4, %5, %cst {dimension_numbers = #tpu.dot_dimension_numbers<[1], [0], [0], [1], [0, 0, 1, 1], [], []>} : vector<8x256xf32>, vector<256x128xf32>, vector<8x128xf32> -> vector<8x128xf32>
    %7 = arith.addf %3, %6 : vector<8x128xf32>
    %c0_6 = arith.constant 0 : index
    %c0_7 = arith.constant 0 : index
    %8 = vector.load %arg6[%c0_6, %c0_7] : memref<8x128xf32, #tpu.memory_space<vmem>>, vector<8x128xf32>
    tpu.vector_store %arg6[%c0_6, %c0_7], %7 {strides = array<i32>} : memref<8x128xf32, #tpu.memory_space<vmem>>, vector<8x128xf32>,
    %c0_i32_8 = arith.constant 0 : i32
    %9 = arith.cmpi eq, %arg1, %c0_i32_8 : i32
    %10 = arith.extui %9 : i1 to i32
    %c0_i32_9 = arith.constant 0 : i32
    %11 = arith.cmpi ne, %10, %c0_i32_9 : i32
    scf.if %11 {
      %c0_10 = arith.constant 0 : index
      %c0_11 = arith.constant 0 : index
      %12 = vector.load %arg6[%c0_10, %c0_11] : memref<8x128xf32, #tpu.memory_space<vmem>>, vector<8x128xf32>
      %c0_12 = arith.constant 0 : index
      %c0_13 = arith.constant 0 : index
      %13 = vector.load %arg4[%c0_12, %c0_13] : memref<1x128xf32, #tpu.memory_space<vmem>>, vector<1x128xf32>
      %14 = vector.broadcast %13 : vector<1x128xf32> to vector<8x128xf32>
      %15 = arith.addf %12, %14 : vector<8x128xf32>
      %c0_14 = arith.constant 0 : index
      %c0_15 = arith.constant 0 : index
      %16 = vector.load %arg5[%c0_14, %c0_15] : memref<8x128xf32, #tpu.memory_space<vmem>>, vector<8x128xf32>
      tpu.vector_store %arg5[%c0_14, %c0_15], %15 {strides = array<i32>} : memref<8x128xf32, #tpu.memory_space<vmem>>, vector<8x128xf32>,
    } else {
    }
    return
  }
  func.func @transform_0(%arg0: i32, %arg1: i32) -> (i32, i32) {
    %c0_i32 = arith.constant 0 : i32
    return %arg0, %arg1 : i32, i32
  }
  func.func @transform_1(%arg0: i32, %arg1: i32) -> (i32, i32) {
    %c0_i32 = arith.constant 0 : i32
    %c0_i32_0 = arith.constant 0 : i32
    return %arg1, %c0_i32 : i32, i32
  }
  func.func @transform_2(%arg0: i32, %arg1: i32) -> (i32, i32) {
    %c0_i32 = arith.constant 0 : i32
    %c0_i32_0 = arith.constant 0 : i32
    %c0_i32_1 = arith.constant 0 : i32
    return %c0_i32, %c0_i32_0 : i32, i32
  }
  func.func @transform_3(%arg0: i32, %arg1: i32) -> (i32, i32) {
    %c0_i32 = arith.constant 0 : i32
    %c0_i32_0 = arith.constant 0 : i32
    return %arg0, %c0_i32 : i32, i32
  }
}

</mosaic_0001>

<bundles_post_ra>
// kernel: flatten_head_forward.1
= control target key start
LH: loop header
LB: loop body
LE: loop exit
PB: predicated region body
PF: predicated region fallthrough
CT: control target
= control target key end

     0   :  { %8 = vsyncpa [#allocation4], 0  ;;  %s435_s0 = inlined_call_operand.hbm [shape: f32[8,256], index: 0, kind: input, shape index: {}]   ;;  %s436_s1 = inlined_call_operand.hbm [shape: f32[256,128], index: 1, kind: input, shape index: {}]   ;;  %s437_s2 = inlined_call_operand.hbm [shape: f32[1,128], index: 2, kind: input, shape index: {}]   ;;  %s438_s3 = inlined_call_operand.hbm [shape: f32[8,128], index: 3, kind: output, shape index: {}]  }
   0x1   :  { %9 = vsyncpa [#allocation7], 0 }
   0x2   :  { %10 = vsyncpa [#allocation5], 0  ;;  %s361_s12 = smov [#allocation6]   ;;  %s267_s16 = scalar_lea.hbm %s436_s1, 4096 }
   0x3   :  { %s26_s13 = sshll.u32 %s361_s12, 4  ;;  %p268_p0 = scmp.ne.s32.totalorder %s436_s1, %s267_s16  ;;  %s27_s13 = int_to_ptr.vmem [resolvable:$true] %s26_s13 }
   0x4   :  { %p271_p1 = scmp.lt.u32.totalorder %s267_s16, %s436_s1 }
   0x6   :  { %p273_p2 = pnand %p271_p1, %p268_p0 }
   0x8   :  { %276 = shalt.err (!%p273_p2)
}
   0x9   :  { %s277_s21 = scalar_lea.vmem %s27_s13, 4096  ;;  %p282_p4 = scmp.lt.s32.totalorder %s27_s13, %s27_s13 }
   0xa   :  { %p278_p3 = scmp.ne.s32.totalorder %s27_s13, %s277_s21  ;;  %p283_p5 = scmp.lt.s32.totalorder %s277_s21, %s277_s21 }
   0xc   :  { %p284_p6 = por %p283_p5, %p282_p4 }
   0xe   :  { %p285_p7 = pnand %p284_p6, %p278_p3 }
  0x10   :  { %288 = shalt.err (!%p285_p7)
}
  0x11   :  { %s362_s22 = smov 128   ;;  %s363_s23 = smov 8  }
  0x12   :  { %32 = dma.hbm_to_vmem [thread:$0]  %s436_s1, 4096, %s27_s13, [#allocation7], %s362_s22, %s362_s22, %s363_s23  }
  0x13   :  { %s364_s26 = smov [#allocation3]   ;;  %s365_s28 = smov [#allocation8]  }
  0x14   :  { %s17_s27 = sshll.u32 %s364_s26, 4  ;;  %s39_s29 = sshll.u32 %s365_s28, 4  ;;  %s18_s27 = int_to_ptr.vmem [resolvable:$true] %s17_s27  ;;  %s40_s29 = int_to_ptr.vmem [resolvable:$true] %s39_s29 }
  0x15   :  { %s289_s5 = scalar_lea.hbm %s435_s0, 256 }
  0x16   :  { %p290_p8 = scmp.ne.s32.totalorder %s435_s0, %s289_s5  ;;  %p293_p9 = scmp.lt.u32.totalorder %s289_s5, %s435_s0 }
  0x18   :  { %p295_p10 = pnand %p293_p9, %p290_p8 }
  0x1a   :  { %298 = shalt.err (!%p295_p10)
}
  0x1b   :  { %s299_s1 = scalar_lea.vmem %s18_s27, 256  ;;  %p304_p12 = scmp.lt.s32.totalorder %s18_s27, %s18_s27 }
  0x1c   :  { %p300_p11 = scmp.ne.s32.totalorder %s18_s27, %s299_s1  ;;  %p305_p13 = scmp.lt.s32.totalorder %s299_s1, %s299_s1 }
  0x1e   :  { %p306_p0 = por %p305_p13, %p304_p12 }
  0x20   :  { %p307_p1 = pnand %p306_p0, %p300_p11 }
  0x22   :  { %310 = shalt.err (!%p307_p1)
}
  0x23   :  { %20 = dma.hbm_to_vmem [thread:$0]  %s435_s0, 256, %s18_s27, [#allocation4]  }
  0x24   :  { %s311_s14 = scalar_lea.hbm %s437_s2, 16 }
  0x25   :  { %p312_p2 = scmp.ne.s32.totalorder %s437_s2, %s311_s14  ;;  %p315_p3 = scmp.lt.u32.totalorder %s311_s14, %s437_s2 }
  0x27   :  { %p317_p4 = pnand %p315_p3, %p312_p2 }
  0x29   :  { %320 = shalt.err (!%p317_p4)
}
  0x2a   :  { %s321_s19 = scalar_lea.vmem %s40_s29, 16  ;;  %s325_s20 = scalar_lea.vmem %s40_s29, 32 }
  0x2b   :  { %p322_p5 = scmp.ne.s32.totalorder %s40_s29, %s321_s19  ;;  %p326_p6 = scmp.lt.s32.totalorder %s40_s29, %s40_s29 }
  0x2c   :  { %p327_p7 = scmp.lt.s32.totalorder %s325_s20, %s321_s19 }
  0x2e   :  { %p328_p8 = por %p327_p7, %p326_p6 }
  0x30   :  { %p329_p9 = pnand %p328_p8, %p322_p5 }
  0x32   :  { %332 = shalt.err (!%p329_p9)
}
  0x33   :  { %42 = dma.hbm_to_vmem [thread:$0]  %s437_s2, 16, %s40_s29, [#allocation7]  }
  0x34   :  { %355 = dma.done.wait [#allocation4], 256  }
  0x35   :  { %356 = vsyncadd [#allocation4], 4294967040 }
  0x36   :  { %357 = dma.done.wait [#allocation7], 4112  }
  0x37   :  { %358 = vsyncadd [#allocation7], 4294963184  ;;  %v76_v0 = vld [vmem:[#allocation6 + $0x80] sm:$0xff]  ;;  %v77_v1 = vld [vmem:[#allocation6 + $0x88] sm:$0xff]  ;;  %s366_s2 = smov [#allocation9]  }
  0x38   :  { %v60_v2 = vld [vmem:[#allocation6] sm:$0xff]  ;;  %v229_v3 = vpack.c.bf16 %v77_v1, %v76_v0  ;;  %v61_v4 = vld [vmem:[#allocation6 + $0x8] sm:$0xff]  ;;  %v78_v5 = vld [vmem:[#allocation6 + $0x90] sm:$0xff]  ;;  %s183_s22 = sshll.u32 %s366_s2, 4  ;;  %s184_s22 = int_to_ptr.vmem [resolvable:$true] %s183_s22 }
  0x39   :  { %v79_v6 = vld [vmem:[#allocation6 + $0x98] sm:$0xff]  ;;  %v231_v7 = vpack.c.bf16 %v61_v4, %v60_v2  ;;  %v62_v9 = vld [vmem:[#allocation6 + $0x10] sm:$0xff]  ;;  %v80_v11 = vld [vmem:[#allocation6 + $0xa0] sm:$0xff]  ;;  %s333_s23 = scalar_lea.vmem %s184_s22, 128  ;;  %p338_p11 = scmp.lt.s32.totalorder %s184_s22, %s184_s22 }
  0x3a   :  { %v233_v8 = vpack.c.bf16 %v79_v6, %v78_v5  ;;  %v63_v10 = vld [vmem:[#allocation6 + $0x18] sm:$0xff]  ;;  %230 = vmatprep.subr.bf16.mxu0 %v229_v3  ;;  %v81_v12 = vld [vmem:[#allocation6 + $0xa8] sm:$0xff]  ;;  %v64_v15 = vld [vmem:[#allocation6 + $0x20] sm:$0xff]  ;;  %p334_p10 = scmp.ne.s32.totalorder %s184_s22, %s333_s23  ;;  %p339_p12 = scmp.lt.s32.totalorder %s333_s23, %s333_s23 }
  0x3b   :  { %232 = vmatpush3.bf16.msra.mxu0 %v231_v7  ;;  %v235_v13 = vpack.c.bf16 %v63_v10, %v62_v9  ;;  %v237_v14 = vpack.c.bf16 %v81_v12, %v80_v11  ;;  %v65_v16 = vld [vmem:[#allocation6 + $0x28] sm:$0xff]  ;;  %v82_v17 = vld [vmem:[#allocation6 + $0xb0] sm:$0xff]  ;;  %v83_v18 = vld [vmem:[#allocation6 + $0xb8] sm:$0xff] }
  0x3c   :  { %234 = vmatprep.subr.bf16.mxu0 %v233_v8  ;;  %v239_v19 = vpack.c.bf16 %v65_v16, %v64_v15  ;;  %v241_v20 = vpack.c.bf16 %v83_v18, %v82_v17  ;;  %v66_v21 = vld [vmem:[#allocation6 + $0x30] sm:$0xff]  ;;  %v67_v22 = vld [vmem:[#allocation6 + $0x38] sm:$0xff]  ;;  %v84_v23 = vld [vmem:[#allocation6 + $0xc0] sm:$0xff]  ;;  %p340_p13 = por %p339_p12, %p338_p11 }
  0x3d   :  { %v85_v24 = vld [vmem:[#allocation6 + $0xc8] sm:$0xff]  ;;  %v59_v25 = vld [vmem:[#allocation3 + $0x8] sm:$0xff]  ;;  %v243_v26 = vpack.c.bf16 %v67_v22, %v66_v21  ;;  %v68_v28 = vld [vmem:[#allocation6 + $0x40] sm:$0xff] }
  0x3e   :  { %156 = vmatprep.mubr.f32.mxu0 %v59_v25  ;;  %v245_v27 = vpack.c.bf16 %v85_v24, %v84_v23  ;;  %v69_v29 = vld [vmem:[#allocation6 + $0x48] sm:$0xff]  ;;  %v86_v30 = vld [vmem:[#allocation6 + $0xd0] sm:$0xff]  ;;  %v87_v31 = vld [vmem:[#allocation6 + $0xd8] sm:$0xff]  ;;  %p341_p0 = pnand %p340_p13, %p334_p10 }
  0x3f   :  { %236 = vmatpush3.bf16.msra.mxu0 %v235_v13  ;;  %v247_v32 = vpack.c.bf16 %v69_v29, %v68_v28  ;;  %v249_v33 = vpack.c.bf16 %v87_v31, %v86_v30  ;;  %v70_v34 = vld [vmem:[#allocation6 + $0x50] sm:$0xff]  ;;  %v71_v35 = vld [vmem:[#allocation6 + $0x58] sm:$0xff]  ;;  %v88_v36 = vld [vmem:[#allocation6 + $0xe0] sm:$0xff] }
  0x40   :  { %238 = vmatprep.subr.bf16.mxu0 %v237_v14  ;;  %v89_v37 = vld [vmem:[#allocation6 + $0xe8] sm:$0xff]  ;;  %v251_v38 = vpack.c.bf16 %v71_v35, %v70_v34  ;;  %v72_v40 = vld [vmem:[#allocation6 + $0x60] sm:$0xff]  ;;  %v90_v42 = vld [vmem:[#allocation6 + $0xf0] sm:$0xff] }
  0x41   :  { %v253_v39 = vpack.c.bf16 %v89_v37, %v88_v36  ;;  %v73_v41 = vld [vmem:[#allocation6 + $0x68] sm:$0xff]  ;;  %v91_v43 = vld [vmem:[#allocation6 + $0xf8] sm:$0xff]  ;;  %v74_v46 = vld [vmem:[#allocation6 + $0x70] sm:$0xff] }
  0x42   :  { %v255_v44 = vpack.c.bf16 %v73_v41, %v72_v40  ;;  %v257_v45 = vpack.c.bf16 %v91_v43, %v90_v42  ;;  %v75_v47 = vld [vmem:[#allocation6 + $0x78] sm:$0xff]  ;;  %v58_v49 = vld [vmem:[#allocation3] sm:$0xff]  ;;  %v193_v52 = vld [vmem:[#allocation8] ss:$0 sm:$0xff] }
  0x43   :  { %240 = vmatpush3.bf16.msra.mxu0 %v239_v19  ;;  %v259_v48 = vpack.c.bf16 %v75_v47, %v74_v46 }
  0x44   :  { %242 = vmatprep.subr.bf16.mxu0 %v241_v20 }
  0x47   :  { %244 = vmatpush3.bf16.msra.mxu0 %v243_v26 }
  0x48   :  { %246 = vmatprep.subr.bf16.mxu0 %v245_v27 }
  0x4b   :  { %248 = vmatpush3.bf16.msra.mxu0 %v247_v32 }
  0x4c   :  { %250 = vmatprep.subr.bf16.mxu0 %v249_v33 }
  0x4f   :  { %252 = vmatpush3.bf16.msra.mxu0 %v251_v38 }
  0x50   :  { %254 = vmatprep.subr.bf16.mxu0 %v253_v39 }
  0x53   :  { %256 = vmatpush3.bf16.msra.mxu0 %v255_v44 }
  0x54   :  { %258 = vmatprep.subr.bf16.mxu0 %v257_v45 }
  0x57   :  { %260 = vmatpush3.bf16.msra.mxu0 %v259_v48 }
  0x5a   :  { %157 = vmatmul.mubr.f32.vlgmr.msra.gmra.mrb[0].mxu0 %v58_v49 }
 0x12d   :  { %v226_v50 = vpop.f32.mrb[0].mxu0 }
 0x12e   :  { %v227_v51 = vpop.f32.mrb[1].mxu0 }
 0x12f   :  { %v228_v53 = vadd.f32 %v227_v51, %v226_v50 }
 0x131   :  { %v175_v54 = vadd.f32 %v228_v53, %v193_v52 }
 0x133   :  { %176 = vst [vmem:[#allocation9] sm:$0xff] %v175_v54 }
 0x134   :  { %344 = shalt.err (!%p341_p0)
}
 0x135   :  { %s345_s26 = scalar_lea.hbm %s438_s3, 128 }
 0x136   :  { %p346_p1 = scmp.ne.s32.totalorder %s438_s3, %s345_s26  ;;  %p349_p2 = scmp.lt.u32.totalorder %s345_s26, %s438_s3 }
 0x138   :  { %p351_p3 = pnand %p349_p2, %p346_p1 }
 0x13a   :  { %354 = shalt.err (!%p351_p3)
}
 0x13b   :  { %186 = dma.vmem_to_hbm [thread:$0]  %s184_s22, 128, %s438_s3, [#allocation5]  }
 0x13c   :  { %359 = dma.done.wait [#allocation5], 128  }
 0x13d   :  { %360 = vsyncadd [#allocation5], 4294967168 }
 0x13e   :  { %190 = vsyncpa [#allocation4], 1 }
 0x13f   :  { %191 = vsyncpa [#allocation7], 1 }
 0x140   :  { %192 = vsyncpa [#allocation5], 1 }

</bundles_post_ra>
